<compile_context>
chip_gen: v7x
topology: tpu7x:2x2x1
jax: 0.10.0
libtpu: 0.0.40
codegen_flags: <defaults>
</compile_context>

<pallas_src>
import functools

import jax
import jax.numpy as jnp
from jax.experimental import pallas as pl
from jax.experimental.pallas import tpu as pltpu

_LANES = 128            # vreg lane width
_MAX_THW_LANES = 8192   # cap on the HW tile (keeps the unrolled body bounded)
_MAX_ACC_ROWS = 256     # cap on tn*C rows per chunk (vreg pressure in the loop)


def _vmem_budgets():
    """Return (per-buffer x-tile budget, vmem_limit_bytes), generation-aware."""
    vmem_cap = None
    try:
        info = pltpu.get_tpu_info()
        vmem_cap = getattr(info, "vmem_capacity_bytes", None)
    except Exception:
        vmem_cap = None
    if vmem_cap is None:
        try:
            kind = jax.devices()[0].device_kind.lower()
            if ("v5" in kind) or ("v6" in kind) or ("v4" in kind):
                vmem_cap = 128 * 1024 * 1024
            else:
                vmem_cap = 64 * 1024 * 1024     # conservative (v7x-safe)
        except Exception:
            vmem_cap = 64 * 1024 * 1024
    if vmem_cap >= 100 * 1024 * 1024:           # v5e / v6e: 128 MiB VMEM
        return 16 * 1024 * 1024, 64 * 1024 * 1024
    return 12 * 1024 * 1024, 48 * 1024 * 1024   # v7x: 64 MiB VMEM


def _largest_divisor_leq(n, limit):
    limit = max(1, min(limit, n))
    for d in range(limit, 0, -1):
        if n % d == 0:
            return d
    return 1


def _pick_tiles(N, C, HW, x_tile_budget, itemsize, block_n=None, block_hw=None):
    """Pick (tn, thw) that divide (N, HW), respect layout rules and VMEM budget."""
    if block_n is None:
        # Keep tn*C <= ~256 rows so the grouped streaming loop stays out of
        # vreg-spill territory, keep tn <= 8, and leave >= 2 batch blocks
        # whenever N >= 2 so both v7x TensorCores get work.
        cap = min(8, max(1, _MAX_ACC_ROWS // max(C, 1)))
        if N >= 2:
            cap = min(cap, max(1, N // 2))
        block_n = _largest_divisor_leq(N, cap)
    else:
        if N % block_n != 0:
            raise ValueError(f"block_n={block_n} must divide N={N}")
    # TODO(synk): for N == 1 a second "parallel" grid axis over C would let both
    # v7x TensorCores participate; single-core path kept for simplicity.

    if block_hw is None:
        per_lane_bytes = block_n * C * itemsize
        if HW % _LANES == 0:
            max_lanes = min(HW, _MAX_THW_LANES,
                            max(_LANES, x_tile_budget // per_lane_bytes))
            best = _LANES
            cand = 2 * _LANES
            while cand <= max_lanes:
                if HW % cand == 0:
                    best = cand
                cand += _LANES
            block_hw = best
        else:
            # Un-tileable HW: take the full extent (last dim == array dim).
            block_hw = HW
    else:
        if HW % block_hw != 0:
            raise ValueError(f"block_hw={block_hw} must divide H*W={HW}")
        if block_hw != HW and block_hw % _LANES != 0:
            raise ValueError("block_hw must be a multiple of 128 or equal H*W")
    return block_n, block_hw


def _cbam2d_kernel(x_ref, w1t_ref, w2t_ref, p_ref, out_ref, sum_acc, max_acc,
                   *, hw_inv, lane_w):
    # x_ref  : (tn, C, thw)      VMEM  -- pipelined x tile (f32 or bf16)
    # w1t_ref: (C, Cr)       f32 VMEM  -- fc1 weight, transposed (resident)
    # w2t_ref: (Cr, C)       f32 VMEM  -- fc2 weight, transposed (resident)
    # p_ref  : (8,)          f32 SMEM  -- [w_sp_max, w_sp_mean, gamma, beta, rm, rv, eps, 0]
    # out_ref: (1, tn, C)    f32 VMEM  -- resident across the HW grid axis
    # sum_acc, max_acc: (tn, C, lane_w) f32 VMEM scratch -- lane-wise running pools
    k = pl.program_id(1)
    nk = pl.num_programs(1)

    @pl.when(k == 0)
    def _init():
        sum_acc[...] = jnp.zeros(sum_acc.shape, sum_acc.dtype)
        max_acc[...] = jnp.full(max_acc.shape, -jnp.inf, max_acc.dtype)

    thw = x_ref.shape[-1]
    nchunks = thw // lane_w

    if nchunks == 1:
        # Degenerate tile (thw == lane_w): single accumulate.
        c = x_ref[...].astype(jnp.float32)
        sum_acc[...] = sum_acc[...] + c
        max_acc[...] = jnp.maximum(max_acc[...], c)
    else:
        # Group 128-lane chunks in vregs first so each accumulator sees one
        # read-modify-write per group instead of per chunk.
        if nchunks % 4 == 0:
            group = 4
        elif nchunks % 2 == 0:
            group = 2
        else:
            group = 1
        ngroups = nchunks // group
        group_span = group * lane_w

        def body(g, carry):
            base = pl.multiple_of(g * group_span, lane_w)
            c = x_ref[:, :, pl.ds(base, lane_w)].astype(jnp.float32)
            s = c
            m = c
            for u in range(1, group):          # static unroll within the group
                off = pl.multiple_of(base + u * lane_w, lane_w)
                c = x_ref[:, :, pl.ds(off, lane_w)].astype(jnp.float32)
                s = s + c
                m = jnp.maximum(m, c)
            sum_acc[...] = sum_acc[...] + s                    # one RMW / group
            max_acc[...] = jnp.maximum(max_acc[...], m)        # one RMW / group
            return carry

        jax.lax.fori_loop(0, ngroups, body, 0, unroll=True)

    # ---- one-shot epilogue at the last HW step
    @pl.when(k == nk - 1)
    def _finalize():
        avg = jnp.sum(sum_acc[...], axis=-1) * hw_inv     # (tn, C)  lane collapse
        mx = jnp.max(max_acc[...], axis=-1)               # (tn, C)  lane collapse

        # ChannelGate2d: shared bottleneck MLP on avg- and max-pooled vectors.
        # Runs once per batch block; tiny, so MXU utilisation is irrelevant.
        w1t = w1t_ref[...]
        w2t = w2t_ref[...]

        def fc(v):
            h = jnp.maximum(
                jnp.dot(v, w1t, preferred_element_type=jnp.float32), 0.0)
            return jnp.dot(h, w2t, preferred_element_type=jnp.float32)

        cg = jax.nn.sigmoid(fc(avg) + fc(mx))             # (tn, C) channel gate

        # SpatialGate2d on the (tn, C, 1, 1) gate: ChannelPool -> 7x7 conv whose
        # only non-padding tap on a 1x1 map is the center -> eval-mode BN -> sigmoid.
        pmax = jnp.max(cg, axis=-1, keepdims=True)        # (tn, 1)
        pmean = jnp.mean(cg, axis=-1, keepdims=True)      # (tn, 1)
        w_sp_max = p_ref[0]
        w_sp_mean = p_ref[1]
        gamma = p_ref[2]
        beta = p_ref[3]
        rm = p_ref[4]
        rv = p_ref[5]
        eps = p_ref[6]
        conv = w_sp_max * pmax + w_sp_mean * pmean
        bn_out = (conv - rm) * jax.lax.rsqrt(rv + eps) * gamma + beta
        scale = jax.nn.sigmoid(bn_out)                    # (tn, 1)

        out_ref[0] = cg * scale                           # broadcast over C


def cbam2d_forward(x, fc1_w, fc2_w, spatial_w, bn_gamma, bn_beta, bn_rm, bn_rv,
                   bn_eps=1e-5, block_n=None, block_hw=None):
    """x: (N, C, H, W) float32/bfloat16 (NCHW, like PyTorch). Returns (N, C, 1, 1)."""
    N, C, H, W = x.shape
    Cr = fc1_w.shape[0]
    HW = H * W

    # Stream x in f32 (default) or bf16 (optional ~2x HBM saving); accumulate f32.
    if x.dtype not in (jnp.float32, jnp.bfloat16):
        x = x.astype(jnp.float32)
    x3 = x.reshape(N, C, HW)
    itemsize = int(jnp.dtype(x3.dtype).itemsize)

    x_tile_budget, vmem_limit = _vmem_budgets()
    tn, thw = _pick_tiles(N, C, HW, x_tile_budget, itemsize, block_n, block_hw)
    assert N % tn == 0 and HW % thw == 0
    lane_w = _LANES if thw % _LANES == 0 else thw
    nb, nhw = N // tn, HW // thw

    w1t = jnp.transpose(fc1_w.reshape(Cr, C)).astype(jnp.float32)   # (C, Cr)
    w2t = jnp.transpose(fc2_w.reshape(C, Cr)).astype(jnp.float32)   # (Cr, C)

    # Center tap of the 7x7 spatial conv weight (1, 2, 7, 7): the only tap that
    # touches real data when the spatial input is 1x1 with padding=3.
    w_sp_center = spatial_w[0, :, 3, 3]                             # (2,)
    params = jnp.array(
        [w_sp_center[0], w_sp_center[1], bn_gamma, bn_beta, bn_rm, bn_rv,
         bn_eps, 0.0],
        dtype=jnp.float32,
    )

    # VMEM accounting: 2x double-buffered x tile + resident scratch/weights.
    x_tile_bytes = tn * C * thw * itemsize
    acc_bytes = 2 * tn * C * lane_w * 4
    weights_bytes = (w1t.size + w2t.size) * 4
    needed = 2 * x_tile_bytes + acc_bytes + weights_bytes + (2 << 20)
    vmem_limit = int(min(max(vmem_limit, needed), 128 * 1024 * 1024))

    cost = pl.CostEstimate(
        flops=int(2 * N * C * HW + 8 * N * C * Cr + 6 * N * C),
        transcendentals=int(N * (C + 1)),
        bytes_accessed=int(x3.size * itemsize + N * C * 4
                           + weights_bytes + params.size * 4),
    )

    kernel = functools.partial(_cbam2d_kernel, hw_inv=1.0 / float(HW),
                               lane_w=lane_w)

    out3 = pl.pallas_call(
        kernel,
        # 3-D output (nb, tn, C): last two block dims equal the full array dims,
        # so any tn (even tn=1 for small N) satisfies the layout rules while the
        # batch axis still splits into >= 2 parallel blocks for v7x megacore.
        out_shape=jax.ShapeDtypeStruct((nb, tn, C), jnp.float32),
        grid_spec=pltpu.PrefetchScalarGridSpec(
            num_scalar_prefetch=0,
            grid=(nb, nhw),
            in_specs=[
                pl.BlockSpec((tn, C, thw), lambda i, k: (i, 0, k)),   # x tile
                pl.BlockSpec((C, Cr), lambda i, k: (0, 0)),           # fc1^T
                pl.BlockSpec((Cr, C), lambda i, k: (0, 0)),           # fc2^T
                pl.BlockSpec(memory_space=pltpu.MemorySpace.SMEM),    # scalars
            ],
            out_specs=pl.BlockSpec((1, tn, C), lambda i, k: (i, 0, 0)),
            scratch_shapes=[
                pltpu.VMEM((tn, C, lane_w), jnp.float32),   # running sum
                pltpu.VMEM((tn, C, lane_w), jnp.float32),   # running max
            ],
        ),
        compiler_params=pltpu.CompilerParams(
            dimension_semantics=("parallel", "arbitrary"),
            vmem_limit_bytes=vmem_limit,
        ),
        cost_estimate=cost,
    )(x3, w1t, w2t, params)

    return out3.reshape(N, C).reshape(N, C, 1, 1)


def cbam2d_reference(x, fc1_w, fc2_w, spatial_w, bn_gamma, bn_beta, bn_rm, bn_rv,
                     bn_eps=1e-5):
    """Pure-JAX reference matching the PyTorch forward (eval-mode BN)."""
    N, C, H, W = x.shape
    Cr = fc1_w.shape[0]
    avg = jnp.mean(x, axis=(2, 3))          # (N, C)
    mx = jnp.max(x, axis=(2, 3))            # (N, C)
    w1 = fc1_w.reshape(Cr, C)
    w2 = fc2_w.reshape(C, Cr)

    def fc(v):
        return jnp.maximum(v @ w1.T, 0.0) @ w2.T

    cg = jax.nn.sigmoid(fc(avg) + fc(mx))   # (N, C)
    pmax = jnp.max(cg, axis=1, keepdims=True)
    pmean = jnp.mean(cg, axis=1, keepdims=True)
    conv = spatial_w[0, 0, 3, 3] * pmax + spatial_w[0, 1, 3, 3] * pmean
    bn = (conv - bn_rm) / jnp.sqrt(bn_rv + bn_eps) * bn_gamma + bn_beta
    scale = jax.nn.sigmoid(bn)
    return (cg * scale).reshape(N, C, 1, 1)


if __name__ == "__main__":
    key = jax.random.PRNGKey(0)
    k_x, k_fc1, k_fc2, k_sp, k_x2 = jax.random.split(key, 5)

    N, C, H, W = 2, 32, 16, 16         # gate_channels=32, reduction_ratio=16
    ratio = 16
    Cr = C // ratio                    # = 2

    x = jax.random.normal(k_x, (N, C, H, W), dtype=jnp.float32)

    # Deterministic synthetic parameters (shapes from the module __init__)
    fc1_w = jax.random.normal(k_fc1, (Cr, C, 1, 1), dtype=jnp.float32) * 0.2
    fc2_w = jax.random.normal(k_fc2, (C, Cr, 1, 1), dtype=jnp.float32) * 0.2
    spatial_w = jax.random.normal(k_sp, (1, 2, 7, 7), dtype=jnp.float32) * 0.2
    bn_gamma = jnp.float32(1.0)
    bn_beta = jnp.float32(0.0)
    bn_rm = jnp.float32(0.0)
    bn_rv = jnp.float32(1.0)

    # 1) forced block_hw=128 -> 2 HW steps: exercises the pipelined accumulator.
    out = cbam2d_forward(x, fc1_w, fc2_w, spatial_w,
                         bn_gamma, bn_beta, bn_rm, bn_rv, block_hw=128)
    out = jax.block_until_ready(out)
    ref = cbam2d_reference(x, fc1_w, fc2_w, spatial_w,
                           bn_gamma, bn_beta, bn_rm, bn_rv)
    assert out.shape == (N, C, 1, 1)
    assert jnp.allclose(out, ref, rtol=1e-4, atol=1e-5), "mismatch (block_hw=128)"

    # 2) auto-tiled path: thw = 256 -> grouped in-vreg combine, single HW step.
    out_auto = cbam2d_forward(x, fc1_w, fc2_w, spatial_w,
                              bn_gamma, bn_beta, bn_rm, bn_rv)
    out_auto = jax.block_until_ready(out_auto)
    assert jnp.allclose(out_auto, ref, rtol=1e-4, atol=1e-5), "mismatch (auto tiles)"

    # 3) larger spatial map: exercises the fori_loop over multiple chunk groups.
    x2 = jax.random.normal(k_x2, (N, C, 32, 32), dtype=jnp.float32)
    out2 = cbam2d_forward(x2, fc1_w, fc2_w, spatial_w,
                          bn_gamma, bn_beta, bn_rm, bn_rv)
    out2 = jax.block_until_ready(out2)
    ref2 = cbam2d_reference(x2, fc1_w, fc2_w, spatial_w,
                            bn_gamma, bn_beta, bn_rm, bn_rv)
    assert jnp.allclose(out2, ref2, rtol=1e-4, atol=1e-5), "mismatch (32x32)"

    print("KERNEL_OK")
</pallas_src>

<mosaic_0001>
module attributes {stable_mosaic.version = 11 : i64} {
  func.func @_cbam2d_kernel(%arg0: i32, %arg1: i32, %arg2: memref<1x32x128xf32, #tpu.memory_space<vmem>>, %arg3: memref<32x2xf32, #tpu.memory_space<vmem>>, %arg4: memref<2x32xf32, #tpu.memory_space<vmem>>, %arg5: memref<8xf32, #tpu.memory_space<smem>>, %arg6: memref<1x1x32xf32, #tpu.memory_space<vmem>>, %arg7: memref<1x32x128xf32, #tpu.memory_space<vmem>>, %arg8: memref<1x32x128xf32, #tpu.memory_space<vmem>>) attributes {dimension_semantics = [#tpu.dimension_semantics<parallel>, #tpu.dimension_semantics<arbitrary>], iteration_bounds = array<i64: 2, 2>, scalar_prefetch = 0 : i64, scratch_operands = 2 : i64, tpu.core_type = #tpu.core_type<tc>, window_params = [{transform_indices = @transform_0, window_bounds = array<i64: 1, 32, 128>}, {pipeline_mode = #tpu.pipeline_mode<synchronous>, transform_indices = @transform_1, window_bounds = array<i64: 32, 2>}, {pipeline_mode = #tpu.pipeline_mode<synchronous>, transform_indices = @transform_2, window_bounds = array<i64: 2, 32>}, {transform_indices = @transform_3, window_bounds = array<i64: 8>}, {transform_indices = @transform_4, window_bounds = array<i64: 1, 1, 32>}]} {
    %c0_i32 = arith.constant 0 : i32
    %0 = arith.cmpi eq, %arg1, %c0_i32 : i32
    %1 = arith.extui %0 : i1 to i32
    %c0_i32_0 = arith.constant 0 : i32
    %2 = arith.cmpi ne, %1, %c0_i32_0 : i32
    scf.if %2 {
      %cst = arith.constant 0.000000e+00 : f32
      %13 = vector.broadcast %cst : f32 to vector<1x32x128xf32>
      %c0_16 = arith.constant 0 : index
      %c0_17 = arith.constant 0 : index
      %c0_18 = arith.constant 0 : index
      %14 = vector.load %arg7[%c0_16, %c0_17, %c0_18] : memref<1x32x128xf32, #tpu.memory_space<vmem>>, vector<1x32x128xf32>
      tpu.vector_store %arg7[%c0_16, %c0_17, %c0_18], %13 {strides = array<i32>} : memref<1x32x128xf32, #tpu.memory_space<vmem>>, vector<1x32x128xf32>,
      %cst_19 = arith.constant 0xFF800000 : f32
      %15 = vector.broadcast %cst_19 : f32 to vector<1x32x128xf32>
      %c0_20 = arith.constant 0 : index
      %c0_21 = arith.constant 0 : index
      %c0_22 = arith.constant 0 : index
      %16 = vector.load %arg8[%c0_20, %c0_21, %c0_22] : memref<1x32x128xf32, #tpu.memory_space<vmem>>, vector<1x32x128xf32>
      tpu.vector_store %arg8[%c0_20, %c0_21, %c0_22], %15 {strides = array<i32>} : memref<1x32x128xf32, #tpu.memory_space<vmem>>, vector<1x32x128xf32>,
    } else {
    }
    %c0 = arith.constant 0 : index
    %c0_1 = arith.constant 0 : index
    %c0_2 = arith.constant 0 : index
    %3 = vector.load %arg2[%c0, %c0_1, %c0_2] : memref<1x32x128xf32, #tpu.memory_space<vmem>>, vector<1x32x128xf32>
    %c0_3 = arith.constant 0 : index
    %c0_4 = arith.constant 0 : index
    %c0_5 = arith.constant 0 : index
    %4 = vector.load %arg7[%c0_3, %c0_4, %c0_5] : memref<1x32x128xf32, #tpu.memory_space<vmem>>, vector<1x32x128xf32>
    %5 = arith.addf %4, %3 : vector<1x32x128xf32>
    %c0_6 = arith.constant 0 : index
    %c0_7 = arith.constant 0 : index
    %c0_8 = arith.constant 0 : index
    %6 = vector.load %arg7[%c0_6, %c0_7, %c0_8] : memref<1x32x128xf32, #tpu.memory_space<vmem>>, vector<1x32x128xf32>
    tpu.vector_store %arg7[%c0_6, %c0_7, %c0_8], %5 {strides = array<i32>} : memref<1x32x128xf32, #tpu.memory_space<vmem>>, vector<1x32x128xf32>,
    %c0_9 = arith.constant 0 : index
    %c0_10 = arith.constant 0 : index
    %c0_11 = arith.constant 0 : index
    %7 = vector.load %arg8[%c0_9, %c0_10, %c0_11] : memref<1x32x128xf32, #tpu.memory_space<vmem>>, vector<1x32x128xf32>
    %8 = arith.maximumf %7, %3 : vector<1x32x128xf32>
    %c0_12 = arith.constant 0 : index
    %c0_13 = arith.constant 0 : index
    %c0_14 = arith.constant 0 : index
    %9 = vector.load %arg8[%c0_12, %c0_13, %c0_14] : memref<1x32x128xf32, #tpu.memory_space<vmem>>, vector<1x32x128xf32>
    tpu.vector_store %arg8[%c0_12, %c0_13, %c0_14], %8 {strides = array<i32>} : memref<1x32x128xf32, #tpu.memory_space<vmem>>, vector<1x32x128xf32>,
    %c1_i32 = arith.constant 1 : i32
    %10 = arith.cmpi eq, %arg1, %c1_i32 : i32
    %11 = arith.extui %10 : i1 to i32
    %c0_i32_15 = arith.constant 0 : i32
    %12 = arith.cmpi ne, %11, %c0_i32_15 : i32
    scf.if %12 {
      %c0_16 = arith.constant 0 : index
      %c0_17 = arith.constant 0 : index
      %c0_18 = arith.constant 0 : index
      %13 = vector.load %arg7[%c0_16, %c0_17, %c0_18] : memref<1x32x128xf32, #tpu.memory_space<vmem>>, vector<1x32x128xf32>
      %cst = arith.constant dense<0.000000e+00> : vector<1x32xf32>
      %14 = vector.multi_reduction <add>, %13, %cst [2] : vector<1x32x128xf32> to vector<1x32xf32>
      %cst_19 = arith.constant 3.906250e-03 : f32
      %15 = vector.broadcast %cst_19 : f32 to vector<1x32xf32>
      %16 = arith.mulf %14, %15 : vector<1x32xf32>
      %c0_20 = arith.constant 0 : index
      %c0_21 = arith.constant 0 : index
      %c0_22 = arith.constant 0 : index
      %17 = vector.load %arg8[%c0_20, %c0_21, %c0_22] : memref<1x32x128xf32, #tpu.memory_space<vmem>>, vector<1x32x128xf32>
      %cst_23 = arith.constant dense<0xFF800000> : vector<1x32xf32>
      %18 = vector.multi_reduction <maximumf>, %17, %cst_23 [2] : vector<1x32x128xf32> to vector<1x32xf32>
      %c0_24 = arith.constant 0 : index
      %c0_25 = arith.constant 0 : index
      %19 = vector.load %arg3[%c0_24, %c0_25] : memref<32x2xf32, #tpu.memory_space<vmem>>, vector<32x2xf32>
      %c0_26 = arith.constant 0 : index
      %c0_27 = arith.constant 0 : index
      %20 = vector.load %arg4[%c0_26, %c0_27] : memref<2x32xf32, #tpu.memory_space<vmem>>, vector<2x32xf32>
      %cst_28 = arith.constant dense<0.000000e+00> : vector<1x2xf32>
      %21 = tpu.matmul %16, %19, %cst_28 {dimension_numbers = #tpu.dot_dimension_numbers<[1], [0], [0], [1], [0, 0, 1, 1], [], []>} : vector<1x32xf32>, vector<32x2xf32>, vector<1x2xf32> -> vector<1x2xf32>
      %cst_29 = arith.constant 0.000000e+00 : f32
      %22 = vector.broadcast %cst_29 : f32 to vector<1x2xf32>
      %23 = arith.maximumf %21, %22 : vector<1x2xf32>
      %cst_30 = arith.constant dense<0.000000e+00> : vector<1x32xf32>
      %24 = tpu.matmul %23, %20, %cst_30 {dimension_numbers = #tpu.dot_dimension_numbers<[1], [0], [0], [1], [0, 0, 1, 1], [], []>} : vector<1x2xf32>, vector<2x32xf32>, vector<1x32xf32> -> vector<1x32xf32>
      %cst_31 = arith.constant dense<0.000000e+00> : vector<1x2xf32>
      %25 = tpu.matmul %18, %19, %cst_31 {dimension_numbers = #tpu.dot_dimension_numbers<[1], [0], [0], [1], [0, 0, 1, 1], [], []>} : vector<1x32xf32>, vector<32x2xf32>, vector<1x2xf32> -> vector<1x2xf32>
      %cst_32 = arith.constant 0.000000e+00 : f32
      %26 = vector.broadcast %cst_32 : f32 to vector<1x2xf32>
      %27 = arith.maximumf %25, %26 : vector<1x2xf32>
      %cst_33 = arith.constant dense<0.000000e+00> : vector<1x32xf32>
      %28 = tpu.matmul %27, %20, %cst_33 {dimension_numbers = #tpu.dot_dimension_numbers<[1], [0], [0], [1], [0, 0, 1, 1], [], []>} : vector<1x2xf32>, vector<2x32xf32>, vector<1x32xf32> -> vector<1x32xf32>
      %29 = arith.addf %24, %28 : vector<1x32xf32>
      %30 = arith.negf %29 : vector<1x32xf32>
      %31 = math.exp %30 : vector<1x32xf32>
      %cst_34 = arith.constant 1.000000e+00 : f32
      %32 = vector.broadcast %cst_34 : f32 to vector<1x32xf32>
      %33 = arith.addf %32, %31 : vector<1x32xf32>
      %34 = arith.divf %32, %33 : vector<1x32xf32>
      %cst_35 = arith.constant dense<0xFF800000> : vector<1xf32>
      %35 = vector.multi_reduction <maximumf>, %34, %cst_35 [1] : vector<1x32xf32> to vector<1xf32>
      %36 = vector.shape_cast %35 : vector<1xf32> to vector<1x1xf32>
      %cst_36 = arith.constant dense<0.000000e+00> : vector<1xf32>
      %37 = vector.multi_reduction <add>, %34, %cst_36 [1] : vector<1x32xf32> to vector<1xf32>
      %38 = vector.shape_cast %37 : vector<1xf32> to vector<1x1xf32>
      %cst_37 = arith.constant 3.200000e+01 : f32
      %39 = vector.broadcast %cst_37 : f32 to vector<1x1xf32>
      %40 = arith.divf %38, %39 : vector<1x1xf32>
      %c0_38 = arith.constant 0 : index
      %41 = memref.load %arg5[%c0_38] : memref<8xf32, #tpu.memory_space<smem>>
      %c1 = arith.constant 1 : index
      %42 = memref.load %arg5[%c1] : memref<8xf32, #tpu.memory_space<smem>>
      %c2 = arith.constant 2 : index
      %43 = memref.load %arg5[%c2] : memref<8xf32, #tpu.memory_space<smem>>
      %c3 = arith.constant 3 : index
      %44 = memref.load %arg5[%c3] : memref<8xf32, #tpu.memory_space<smem>>
      %c4 = arith.constant 4 : index
      %45 = memref.load %arg5[%c4] : memref<8xf32, #tpu.memory_space<smem>>
      %c5 = arith.constant 5 : index
      %46 = memref.load %arg5[%c5] : memref<8xf32, #tpu.memory_space<smem>>
      %c6 = arith.constant 6 : index
      %47 = memref.load %arg5[%c6] : memref<8xf32, #tpu.memory_space<smem>>
      %48 = vector.broadcast %41 : f32 to vector<1x1xf32>
      %49 = arith.mulf %48, %36 : vector<1x1xf32>
      %50 = vector.broadcast %42 : f32 to vector<1x1xf32>
      %51 = arith.mulf %50, %40 : vector<1x1xf32>
      %52 = arith.addf %49, %51 : vector<1x1xf32>
      %53 = vector.broadcast %45 : f32 to vector<1x1xf32>
      %54 = arith.subf %52, %53 : vector<1x1xf32>
      %55 = arith.addf %46, %47 : f32
      %56 = math.rsqrt %55 : f32
      %57 = vector.broadcast %56 : f32 to vector<1x1xf32>
      %58 = arith.mulf %54, %57 : vector<1x1xf32>
      %59 = vector.broadcast %43 : f32 to vector<1x1xf32>
      %60 = arith.mulf %58, %59 : vector<1x1xf32>
      %61 = vector.broadcast %44 : f32 to vector<1x1xf32>
      %62 = arith.addf %60, %61 : vector<1x1xf32>
      %63 = arith.negf %62 : vector<1x1xf32>
      %64 = math.exp %63 : vector<1x1xf32>
      %cst_39 = arith.constant 1.000000e+00 : f32
      %65 = vector.broadcast %cst_39 : f32 to vector<1x1xf32>
      %66 = arith.addf %65, %64 : vector<1x1xf32>
      %67 = arith.divf %65, %66 : vector<1x1xf32>
      %68 = vector.broadcast %67 : vector<1x1xf32> to vector<1x32xf32>
      %69 = arith.mulf %34, %68 : vector<1x32xf32>
      %c0_40 = arith.constant 0 : index
      %c0_41 = arith.constant 0 : index
      %c0_42 = arith.constant 0 : index
      %70 = vector.load %arg6[%c0_40, %c0_41, %c0_42] : memref<1x1x32xf32, #tpu.memory_space<vmem>>, vector<1x1x32xf32>
      %71 = vector.shape_cast %70 : vector<1x1x32xf32> to vector<1x32xf32>
      %72 = vector.shape_cast %69 : vector<1x32xf32> to vector<1x1x32xf32>
      tpu.vector_store %arg6[%c0_40, %c0_41, %c0_42], %72 {strides = array<i32>} : memref<1x1x32xf32, #tpu.memory_space<vmem>>, vector<1x1x32xf32>,
    } else {
    }
    return
  }
  func.func @transform_0(%arg0: i32, %arg1: i32) -> (i32, i32, i32) {
    %c0_i32 = arith.constant 0 : i32
    %c0_i32_0 = arith.constant 0 : i32
    return %arg0, %c0_i32, %arg1 : i32, i32, i32
  }
  func.func @transform_1(%arg0: i32, %arg1: i32) -> (i32, i32) {
    %c0_i32 = arith.constant 0 : i32
    %c0_i32_0 = arith.constant 0 : i32
    %c0_i32_1 = arith.constant 0 : i32
    return %c0_i32, %c0_i32_0 : i32, i32
  }
  func.func @transform_2(%arg0: i32, %arg1: i32) -> (i32, i32) {
    %c0_i32 = arith.constant 0 : i32
    %c0_i32_0 = arith.constant 0 : i32
    %c0_i32_1 = arith.constant 0 : i32
    return %c0_i32, %c0_i32_0 : i32, i32
  }
  func.func @transform_3(%arg0: i32, %arg1: i32) -> i32 {
    %c0_i32 = arith.constant 0 : i32
    %c0_i32_0 = arith.constant 0 : i32
    return %c0_i32 : i32
  }
  func.func @transform_4(%arg0: i32, %arg1: i32) -> (i32, i32, i32) {
    %c0_i32 = arith.constant 0 : i32
    %c0_i32_0 = arith.constant 0 : i32
    %c0_i32_1 = arith.constant 0 : i32
    return %arg0, %c0_i32, %c0_i32_0 : i32, i32, i32
  }
}

</mosaic_0001>

<bundles_post_ra>
// kernel: tpu_custom_call.1
= control target key start
LH: loop header
LB: loop body
LE: loop exit
PB: predicated region body
PF: predicated region fallthrough
CT: control target
= control target key end

     0   :  { %s1529_s0 = inlined_call_operand.hbm [shape: f32[2,32,256], index: 0, kind: input, shape index: {}]   ;;  %s1530_s1 = inlined_call_operand.vmem [shape: f32[32,2], index: 1, kind: input, shape index: {}]   ;;  %s1531_s2 = inlined_call_operand.vmem [shape: f32[2,32], index: 2, kind: input, shape index: {}]   ;;  %s1532_s3 = inlined_call_operand.vmem [shape: f32[8], index: 3, kind: input, shape index: {}]   ;;  %s1533_s4 = inlined_call_operand.hbm [shape: f32[2,1,32], index: 4, kind: output, shape index: {}]  }
   0x1   :  { %1544 = sst [smem:[#allocation19_spill]] %s1532_s3 }
   0x2   :  { %9 = vsyncpa [#allocation5], 0 }
   0x3   :  { %11 = vsyncpa [#allocation5 + $0x1], 0 }
   0x4   :  { %12 = vsyncpa [#allocation7], 0 }
   0x5   :  { %13 = vsyncpa [#allocation6], 0 }
   0x6   :  { %15 = vsyncpa [#allocation6 + $0x1], 0  ;;  %s1255_s15 = smov 0   ;;  %s1257_s16 = smov 0  }
   0x7   :  { %s1259_s17 = smov 0   ;;  %s1261_s18 = smov 0  }
   0x8   :  { %s1263_s19 = smov 0   ;;  %s1265_s20 = smov 0  }
   0x9   :  { %s1267_s21 = smov 0   ;;  %s1269_s22 = smov 0  }
   0xa   :  { %s1271_s23 = smov 0   ;;  %s1273_s24 = smov 0  }
   0xb   :  { %s1275_s25 = smov 0  }
   0xc LB: > { %1545 = sst [smem:[#allocation13_spill]] %s1177_s15  ;;  %s824_s26 = sadd.s32 4294967295, %s1217_s25   ;;  %s1217_s25 = sphi %s1275_s25, %s21_s25   ;;  %s1213_s24 = sphi %s1273_s24, %s1578_s24   ;;  %s1209_s23 = sphi %s1271_s23, %s1569_s23   ;;  %s1205_s22 = sphi %s1269_s22, %s1577_s22   ;;  %s1201_s21 = sphi %s1267_s21, %s1568_s21   ;;  %s1197_s20 = sphi %s1265_s20, %s1576_s20   ;;  %s1193_s19 = sphi %s1263_s19, %s1575_s19   ;;  %s1189_s18 = sphi %s1261_s18, %s1574_s18   ;;  %s1185_s17 = sphi %s1259_s17, %s1573_s17   ;;  %s1181_s16 = sphi %s1257_s16, %s1572_s16   ;;  %s1177_s15 = sphi %s1255_s15, %s1571_s15  }
   0xd   : > { %1546 = sst [smem:[#allocation14_spill]] %s1209_s23  ;;  %s825_s27 = sadd.s32 4294967294, %s1217_s25  }
   0xe   : > { %1547 = sst [smem:[#allocation15_spill]] %s1217_s25  ;;  %p49_p0 = scmp.ne.s32.totalorder %s1197_s20, %s1193_s19 }
   0xf   : > { %p50_p1 = scmp.eq.s32.totalorder %s1217_s25, 0  ;;  %p55_p2 = scmp.ne.s32.totalorder %s1193_s19, %s1189_s18 }
  0x10   : > { %p1315_p3 = scmp.eq.s32.totalorder %s824_s26, 0  ;;  %p141_p5 = scmp.ne.s32.totalorder %s1185_s17, %s1181_s16 }
  0x11   : > { %p1320_p4 = por %p50_p1, %p49_p0  ;;  %p142_p7 = scmp.eq.s32.totalorder %s824_s26, 3 }
  0x12   : > { %p1328_p6 = por %p1315_p3, %p55_p2  ;;  %p147_p8 = scmp.ne.s32.totalorder %s1181_s16, %s1177_s15 }
  0x13   : > { %p148_p9 = scmp.eq.s32.totalorder %s825_s27, 3  ;;  %p1334_p10 = por %p142_p7, %p141_p5 }
  0x14   : > { %s1550_s6 = scalar_select %p1328_p6, 1, 0 }
  0x15   : > { %s1551_s7 = scalar_select %p1334_p10, 1, 0 }
  0x16   : > { %p826_p11 = scmp.ge.s32.totalorder %s1217_s25, 1  ;;  %p1339_p12 = por %p148_p9, %p147_p8 }
  0x17   : > { %p155_p13 = scmp.lt.s32.totalorder %s1217_s25, 5  ;;  %s1554_s3 = sld [smem:[#allocation19_spill]] }
  0x18   : > { %s1552_s8 = scalar_select %p1339_p12, 1, 0 }
  0x19   : > { %p1347_p0 = pnand %p826_p11, %p155_p13  ;;  %p936_p2 = scmp.lt.s32.totalorder %s1217_s25, 4 }
  0x1a   : > { %1553 = sst [smem:[#allocation16_spill]] %s1552_s8 }
  0x1b   : > { %s1555_s12 = scalar_select %p1347_p0, 1, 0 }
  0x1c   : > { %p923_p1 = pneg %p1347_p0  ;;  %p1358_p7 = pnand %p936_p2, %p1320_p4 }
  0x1d   : > { %s174_s11 = sshll.u32 %s1554_s3, 4  ;;  %s175_s11 = int_to_ptr.vmem [resolvable:$true] %s174_s11 }
  0x1e   : > { %p924_p5 = pnand %p923_p1, %p1315_p3  ;;  %s1046_s14 = scalar_lea.vmem %s175_s11, 16 }
  0x1f   : > { %p1047_p8 = scmp.ne.s32.totalorder %s175_s11, %s1046_s14  ;;  %p1054_p13 = scmp.lt.s32.totalorder %s175_s11, %s175_s11 }
  0x20   : > { %p1048_p9 = pneg %p924_p5  ;;  %p1055_p10 = scmp.lt.s32.totalorder %s1046_s14, %s1046_s14 }
  0x22   : > { %p1049_p12 = pnand %p1048_p9, %p1047_p8  ;;  %p1056_p6 = por %p1055_p10, %p1054_p13 }
  0x24   : > { %p1050_p11 = pneg %p1049_p12 }
  0x26   : > { %p1057_p0 = pnand %p1056_p6, %p1050_p11 }
  0x28   : > { %1060 = shalt.err (!%p1057_p0)
}
  0x29   : > { %s1219_s18 = smov [#allocation8]   ;;  %s30_s26 = sadd.s32 1, %s1209_s23 }
  0x2a   : > { %926 = dma.vmem_to_smem (!%p924_p5), %s175_s11, 16, %s1219_s18, [#allocation7]  }
  0x2b   : > { %s33_s27 = sadd.s32 1, %s1213_s24  ;;  %p31_p4 = scmp.ge.s32.totalorder %s30_s26, 2 }
  0x2c   : > { %s185_s5 = sand.u32 1, %s1197_s20   ;;  %s830_s14 = sshll.u32 %s1213_s24, 3 }
  0x2d   : > { %s829_s9 = sshll.u32 %s185_s5, 5  ;;  %s1580_s26 = smov (%p31_p4, %s30_s26), 0 }
  0x2e   : > { %1557 = sst [smem:[#allocation17_spill]] %s1580_s26  ;;  %s1582_s27 = smov (!%p31_p4, %s33_s27), %s1213_s24 }
  0x2f   : > { %s38_s10 = ssub.s32 %s1209_s23, %s1580_s26  ;;  %p35_p6 = scmp.ge.s32.totalorder %s1582_s27, 2 }
  0x30   : > { %s194_s28 = sadd.s32 %s1209_s23, %s830_s14  ;;  %s189_s11 = scalar_lea.vmem [#allocation4], %s829_s9 }
  0x31   : > { %s197_s18 = sshll.u32 %s189_s11, 4  ;;  %s1584_s27 = smov (%p35_p6, %s1582_s27), 0  ;;  %s1374_s18 = int_to_ptr.vmem [resolvable:$true] %s197_s18 }
  0x32   : > { %1558 = sst [smem:[#allocation18_spill]] %s1584_s27  ;;  %s831_s30 = sshll.u32 %s194_s28, 7 }
  0x33   : > { %s37_s3 = ssub.s32 %s1213_s24, %s1584_s27  ;;  %s1381_s25 = scalar_lea.hbm %s1529_s0, %s831_s30 }
  0x34   : > { %s39_s14 = sor.u32 %s38_s10, %s37_s3  ;;  %p129_p10 = scmp.eq.s32.totalorder %s37_s3, 0 }
  0x35   : > { %p40_p12 = scmp.eq.s32.totalorder %s39_s14, 0  ;;  %s1559_s9 = sadd.s32 1, %s1185_s17 }
  0x36   : > { %s1386_s11 = scalar_select %p129_p10, %s1185_s17, %s1559_s9  }
  0x37   : > { %s1560_s26 = sadd.s32 1, %s1197_s20  ;;  %s1393_s23 = scalar_lea.sflag [#allocation5], %s185_s5 }
  0x38   : > { %s1391_s28 = scalar_select %p40_p12, %s1197_s20, %s1560_s26  }
  0x39   : > { %s1061_s27 = scalar_lea.hbm %s1381_s25, 512  ;;  %p1063_p1 = pneg %p1358_p7 }
  0x3a   : > { %p1062_p0 = scmp.ne.s32.totalorder %s1381_s25, %s1061_s27  ;;  %s1066_s3 = scalar_lea.hbm %s1529_s0, 2048 }
  0x3b   : > { %p1067_p8 = scmp.lt.u32.totalorder %s1381_s25, %s1529_s0  ;;  %p1068_p9 = scmp.lt.u32.totalorder %s1066_s3, %s1061_s27 }
  0x3c   : > { %p1064_p2 = pnand %p1063_p1, %p1062_p0  ;;  %p1070_p13 = scmp.lt.u32.totalorder %s1061_s27, %s1381_s25 }
  0x3d   : > { %p1069_p11 = por %p1068_p9, %p1067_p8 }
  0x3e   : > { %p1065_p5 = pneg %p1064_p2 }
  0x3f   : > { %p1071_p4 = por %p1070_p13, %p1069_p11 }
  0x41   : > { %p1072_p6 = pnand %p1071_p4, %p1065_p5 }
  0x43   : > { %1075 = shalt.err (!%p1072_p6)
}
  0x44   : > { %s1076_s26 = scalar_lea.vmem %s1374_s18, 512  ;;  %s1220_s5 = smov [#allocation4]  }
  0x45   : > { %p1077_p10 = scmp.ne.s32.totalorder %s1374_s18, %s1076_s26  ;;  %s1081_s14 = sshll.u32 %s1220_s5, 4  ;;  %s1082_s14 = int_to_ptr.vmem [resolvable:$false] %s1081_s14 }
  0x46   : > { %s1083_s9 = scalar_lea.vmem %s1082_s14, 1024  ;;  %p1084_p2 = scmp.lt.s32.totalorder %s1374_s18, %s1082_s14 }
  0x47   : > { %p1079_p12 = pnand %p1077_p10, %p1063_p1  ;;  %p1085_p8 = scmp.lt.s32.totalorder %s1083_s9, %s1076_s26 }
  0x49   : > { %p1080_p0 = pneg %p1079_p12  ;;  %p1086_p9 = por %p1085_p8, %p1084_p2 }
  0x4b   : > { %p1087_p11 = pnand %p1086_p9, %p1080_p0 }
  0x4d   : > { %1090 = shalt.err (!%p1087_p11)
}
  0x4e   : > { %s1221_s27 = smov 256   ;;  %s1222_s15 = smov 128  }
  0x4f   : > { %s1223_s30 = smov 8   ;;  %p1561_p1 = scmp.ne.s32.totalorder %s1555_s12, 0 }
  0x50   : > { %930 = dma.hbm_to_vmem [thread:$0]  (!%p1358_p7), %s1381_s25, 512, %s1374_s18, %s1393_s23, %s1221_s27, %s1222_s15, %s1223_s30  }
  0x51   : > { %209 = sbr.rel (%p1561_p1) target bundleno = 937 (0x3a9), region = 36  ;;  %s211_s3 = sand.u32 (!%p1561_p1), 1, %s1193_s19  }
  0x52   : > { %s833_s8 = sshll.u32 (!%p1561_p1), %s211_s3, 5  ;;  %s212_s10 = scalar_lea.sflag (!%p1561_p1), [#allocation5], %s211_s3 }
  0x53   : > { %s215_s26 = scalar_lea.vmem (!%p1561_p1), [#allocation4], %s833_s8  ;;  %p1562_p5 = scmp.ne.s32.totalorder (!%p1561_p1), %s1550_s6, 0 }
  0x58   : > { %1164 = dma.done.wait (%p1562_p5), %s212_s10, 512  }
  0x59   : > { %1166 = vsyncadd (%p1562_p5), %s212_s10, 4294966784 }
  0x5a   : > { %1168 = dma.done.wait (%p1315_p3), [#allocation7], 16  }
  0x5b   : > { %1170 = vsyncadd (%p1315_p3), [#allocation7], 4294967280 }
  0x5c   : > { %224 = sfence }
  0x5d   : > { %s242_s23 = sand.u32 1, %s1181_s16   ;;  %p835_p7 = scmp.ne.s32.totalorder %s1201_s21, 0 }
  0x5e   : > { %s1435_s25 = scalar_lea.vmem [#allocation9], %s242_s23  ;;  %v1224_v0 = vmov (!%p835_p7), 0.0   ;;  %v1225_v1 = vmov (!%p835_p7), -inf  }
  0x5f   : > { %247 = sbr.rel (%p835_p7) target bundleno = 102 (0x66), region = 48  ;;  %248 = vst [vmem:[#allocation2] sm:$0xff] (!%p835_p7), %v1224_v0  ;;  %249 = vst [vmem:[#allocation2 + $0x8] sm:$0xff] (!%p835_p7), %v1224_v0 }
  0x60   : > { %250 = vst [vmem:[#allocation2 + $0x10] sm:$0xff] (!%p835_p7), %v1224_v0  ;;  %251 = vst [vmem:[#allocation2 + $0x18] sm:$0xff] (!%p835_p7), %v1224_v0 }
  0x61   : > { %252 = vst [vmem:[#allocation3] sm:$0xff] (!%p835_p7), %v1225_v1  ;;  %253 = vst [vmem:[#allocation3 + $0x8] sm:$0xff] (!%p835_p7), %v1225_v1 }
  0x62   : > { %254 = vst [vmem:[#allocation3 + $0x10] sm:$0xff] (!%p835_p7), %v1225_v1  ;;  %255 = vst [vmem:[#allocation3 + $0x18] sm:$0xff] (!%p835_p7), %v1225_v1 }
  0x66 PF: > { %v256_v2 = vld [vmem:[%s215_s26] sm:$0xff]  ;;  %v257_v4 = vld [vmem:[%s215_s26 + $0x8] sm:$0xff]  ;;  %v258_v7 = vld [vmem:[%s215_s26 + $0x10] sm:$0xff]  ;;  %p836_p3 = scmp.ne.s32.totalorder %s1201_s21, 1 }
  0x67   : > { %v260_v3 = vld [vmem:[#allocation2] sm:$0xff]  ;;  %v261_v6 = vld [vmem:[#allocation2 + $0x8] sm:$0xff]  ;;  %v262_v8 = vld [vmem:[#allocation2 + $0x10] sm:$0xff]  ;;  %v1226_v33 = vmov (!%p836_p3), 0.0|0.0   ;;  %vm1227_vm0 = vmmov (!%p836_p3), 0   ;;  %v1228_v37 = vmov (!%p836_p3), 0.0   ;;  %v325_v38 = vlaneseq (!%p836_p3) }
  0x68   : > { %v264_v5 = vadd.f32 %v260_v3, %v256_v2  ;;  %v265_v9 = vadd.f32 %v261_v6, %v257_v4  ;;  %v266_v10 = vadd.f32 %v262_v8, %v258_v7  ;;  %v259_v11 = vld [vmem:[%s215_s26 + $0x18] sm:$0xff]  ;;  %v272_v13 = vld [vmem:[#allocation3] sm:$0xff]  ;;  %v273_v16 = vld [vmem:[#allocation3 + $0x8] sm:$0xff]  ;;  %287 = sbr.rel (%p836_p3) target bundleno = 912 (0x390), region = 52  ;;  %900 = vmatprep.subr.bf16.mxu0 (!%p836_p3), %v1226_v33  ;;  %906 = vmatprep.subr.bf16.mxu1 (!%p836_p3), %v1226_v33  ;;  %vm336_vm1 = vcmask (!%p836_p3), 130112   ;;  %s848_s15 = sld [smem:[#allocation8 + $0x5]] (!%p836_p3) }
  0x69   : > { %v263_v12 = vld [vmem:[#allocation2 + $0x18] sm:$0xff]  ;;  %v276_v15 = vmax.f32 %v272_v13, %v256_v2  ;;  %v274_v17 = vld [vmem:[#allocation3 + $0x10] sm:$0xff]  ;;  %v277_v19 = vmax.f32 %v273_v16, %v257_v4  ;;  %v316_v30 = vld [vmem:[%s1530_s1] sm:$0xff] (!%p836_p3)  ;;  %876 = vmatprep.mubr.msk.f32.mxu0 (!%p836_p3), %vm1227_vm0, %v1228_v37  ;;  %887 = vmatprep.mubr.msk.f32.mxu1 (!%p836_p3), %vm1227_vm0, %v1228_v37  ;;  %v326_v39 = vand.u32 (!%p836_p3), 127, %v325_v38  ;;  %v328_v40 = vshrl.u32 (!%p836_p3), %v325_v38, 7  ;;  %s849_s30 = sld [smem:[#allocation8 + $0x6]] (!%p836_p3) }
  0x6a   : > { %268 = vst [vmem:[#allocation2] sm:$0xff] %v264_v5  ;;  %v267_v14 = vadd.f32 %v263_v12, %v259_v11  ;;  %v275_v18 = vld [vmem:[#allocation3 + $0x18] sm:$0xff]  ;;  %269 = vst [vmem:[#allocation2 + $0x8] sm:$0xff] %v265_v9  ;;  %v278_v20 = vmax.f32 %v274_v17, %v258_v7  ;;  %v317_v31 = vld [vmem:[%s1530_s1 + $0x8] sm:$0xff] (!%p836_p3)  ;;  %vm343_vm2 = vcmask (!%p836_p3), 195712   ;;  %vm350_vm3 = vcmask (!%p836_p3), 261312  }
  0x6b   : > { %270 = vst [vmem:[#allocation2 + $0x10] sm:$0xff] %v266_v10  ;;  %v279_v21 = vmax.f32 %v275_v18, %v259_v11  ;;  %280 = vst [vmem:[#allocation3] sm:$0xff] %v276_v15  ;;  %v901_v32 = vpack.c.bf16 (!%p836_p3), %v317_v31, %v316_v30  ;;  %v318_v34 = vld [vmem:[%s1530_s1 + $0x10] sm:$0xff] (!%p836_p3)  ;;  %v319_v35 = vld [vmem:[%s1530_s1 + $0x18] sm:$0xff] (!%p836_p3)  ;;  %v345_v41 = vadd.s32 (!%p836_p3), 4294967272, %v326_v39  ;;  %v331_v42 = vadd.s32 (!%p836_p3), 4294967288, %v326_v39 }
  0x6c   : > { %271 = vst [vmem:[#allocation2 + $0x18] sm:$0xff] %v267_v14  ;;  %281 = vst [vmem:[#allocation3 + $0x8] sm:$0xff] %v277_v19  ;;  %v904_v36 = vpack.c.bf16 (!%p836_p3), %v319_v35, %v318_v34  ;;  %v338_v43 = vadd.s32 (!%p836_p3), 4294967280, %v326_v39  ;;  %v329_v46 = vsub.s32 (!%p836_p3), %v326_v39, %v328_v40  ;;  %vm352_vm4 = vcmask (!%p836_p3), 261120   ;;  %v320_v10 = vld [vmem:[%s1531_s2] sm:$0x3] (!%p836_p3) }
  0x6d   : > { %282 = vst [vmem:[#allocation3 + $0x10] sm:$0xff] %v278_v20  ;;  %283 = vst [vmem:[#allocation3 + $0x18] sm:$0xff] %v279_v21  ;;  %902 = vmatpush3.bf16.msra.mxu0 (!%p836_p3), %v901_v32  ;;  %908 = vmatpush3.bf16.msra.mxu1 (!%p836_p3), %v901_v32  ;;  %v348_v48 = vsub.s32 (!%p836_p3), %v345_v41, %v328_v40  ;;  %v334_v49 = vsub.s32 (!%p836_p3), %v331_v42, %v328_v40  ;;  %vm526_vm5 = vcmask (!%p836_p3), 1041408   ;;  %vm522_vm6 = vcmask (!%p836_p3), 15360   ;;  %s844_s8 = sld [smem:[#allocation8 + $0x1]] (!%p836_p3)  ;;  %s688_s10 = sld [smem:[#allocation8]] (!%p836_p3) }
  0x6e   : > { %903 = vmatprep.subr.bf16.mxu0 (!%p836_p3), %v1226_v33  ;;  %909 = vmatprep.subr.bf16.mxu1 (!%p836_p3), %v1226_v33  ;;  %v341_v50 = vsub.s32 (!%p836_p3), %v338_v43, %v328_v40  ;;  %vm679_vm7 = vcmask (!%p836_p3), 253952   ;;  %s847_s26 = sld [smem:[#allocation8 + $0x4]] (!%p836_p3)  ;;  %s845_s29 = sld [smem:[#allocation8 + $0x2]] (!%p836_p3) }
  0x6f   : > { %s702_s3 = sadd.f32 %s849_s30, %s848_s15  ;;  %s846_s6 = sld [smem:[#allocation8 + $0x3]] }
  0x71   : > { %v288_v23 = vld [vmem:[#allocation2] sm:$0xff]  ;;  %v289_v25 = vld [vmem:[#allocation2 + $0x8] sm:$0xff]  ;;  %905 = vmatpush3.bf16.msra.mxu0 %v904_v36  ;;  %911 = vmatpush3.bf16.msra.mxu1 %v904_v36  ;;  %v703_v17 = vstv %s702_s3 }
  0x72   : > { %v290_v22 = vld [vmem:[#allocation2 + $0x10] sm:$0xff]  ;;  %292 = vadd.xlane.f32.xlu0 %v288_v23  ;;  %v304_v27 = vld [vmem:[#allocation3] sm:$0xff]  ;;  %895 = vmatprep.subr.mxu0 %v1228_v37  ;;  %1036 = vrsqrt.f32 %v703_v17 }
  0x73   : > { %296 = vadd.xlane.f32.xlu1 %v290_v22  ;;  %v291_v24 = vld [vmem:[#allocation2 + $0x18] sm:$0xff]  ;;  %v305_v26 = vld [vmem:[#allocation3 + $0x8] sm:$0xff]  ;;  %890 = vmatprep.subr.mxu1 %v1228_v37  ;;  %v697_v30 = vstv %s844_s8  ;;  %v695_v32 = vstv %s688_s10 }
  0x74   : > { %v306_v28 = vld [vmem:[#allocation3 + $0x10] sm:$0xff]  ;;  %v307_v29 = vld [vmem:[#allocation3 + $0x18] sm:$0xff]  ;;  %v708_v41 = vstv %s845_s29 }
  0x75   : > { %v710_v43 = vstv %s846_s6 }
  0x76   : > { %294 = vadd.xlane.f32.xlu0 %v289_v25 }
  0x77   : > { %298 = vadd.xlane.f32.xlu1 %v291_v24 }
  0x7a   : > { %308 = vmax.xlane.f32.xlu0 %v304_v27 }
  0x7b   : > { %310 = vmax.xlane.f32.xlu1 %v305_v26 }
  0x7c   : > { %v1037_v18 = vpop.eup %1036 }
  0x7d   : > { %913 = vpush %v1037_v18 }
  0x7e   : > { %312 = vmax.xlane.f32.xlu0 %v306_v28 }
  0x7f   : > { %314 = vmax.xlane.f32.xlu1 %v307_v29 }
  0xae   : > { %s914_s21 = spop %913 }
  0xaf   : > { %v706_v39 = vstv %s914_s21 }
  0xff   : > { %v293_v45 = vpop.xlane.xlu0 %292 }
 0x100   : > { %v297_v44 = vpop.xlane.xlu1 %296  ;;  %v300_v47 = vmul.f32 0.00390625, %v293_v45 }
 0x101   : > { %v302_v51 = vmul.f32 0.00390625, %v297_v44 }
 0x102   : > { %v330_v56 = vrot.slane %v300_v47, %v329_v46 }
 0x103   : > { %v295_v53 = vpop.xlane.xlu0 %294  ;;  %v342_v59 = vrot.slane %v302_v51, %v341_v50 }
 0x104   : > { %v299_v52 = vpop.xlane.xlu1 %298  ;;  %v301_v55 = vmul.f32 0.00390625, %v295_v53 }
 0x105   : > { %v303_v54 = vmul.f32 0.00390625, %v299_v52 }
 0x106   : > { %v335_v58 = vrot.slane %v301_v55, %v334_v49 }
 0x107   : > { %v349_v57 = vrot.slane %v303_v54, %v348_v48  ;;  %v309_v61 = vpop.xlane.xlu0 %308 }
 0x108   : > { %v311_v60 = vpop.xlane.xlu1 %310  ;;  %v337_v62 = vsel %vm336_vm1, %v335_v58, %v330_v56  ;;  %v433_v0 = vrot.slane %v309_v61, %v329_v46 }
 0x109   : > { %v437_v63 = vrot.slane %v311_v60, %v334_v49  ;;  %v344_v1 = vsel %vm343_vm2, %v342_v59, %v337_v62 }
 0x10a   : > { %v351_v2 = vsel %vm350_vm3, %v349_v57, %v344_v1 }
 0x10b   : > { %877 = vmatmul.mubr.msk.f32.vlgmr.msra.gmra.mrb[0].mxu0 %vm352_vm4, %v351_v2  ;;  %v313_v3 = vpop.xlane.xlu0 %312  ;;  %v438_v7 = vsel %vm336_vm1, %v437_v63, %v433_v0 }
 0x10c   : > { %v315_v4 = vpop.xlane.xlu1 %314  ;;  %v442_v5 = vrot.slane %v313_v3, %v341_v50  ;;  %897 = vmatprep.mubr.msk.f32.mxu0 %vm1227_vm0, %v1228_v37  ;;  %896 = vmatpush3.msk.msra.mxu0 %vm526_vm5, %v320_v10 }
 0x10d   : > { %v447_v6 = vrot.slane %v315_v4, %v348_v48 }
 0x10e   : > { %v443_v8 = vsel %vm343_vm2, %v442_v5, %v438_v7 }
 0x10f   : > { %v448_v9 = vsel %vm350_vm3, %v447_v6, %v443_v8 }
 0x110   : > { %888 = vmatmul.mubr.msk.f32.vlgmr.msra.gmra.mrb[0].mxu1 %vm352_vm4, %v448_v9 }
 0x111   : > { %892 = vmatprep.mubr.msk.f32.mxu1 %vm1227_vm0, %v1228_v37  ;;  %891 = vmatpush3.msk.msra.mxu1 %vm526_vm5, %v320_v10  ;;  %v700_v37 = vstv %s847_s26 }
 0x1de   : > { %v421_v11 = vpop.f32.mrb[0].mxu0 }
 0x1df   : > { %v425_v12 = vmax.f32 %v421_v11, 0.0  ;;  %v878_v13 = vpop.f32.mrb[1].mxu0 }
 0x1e1   : > { %898 = vmatmul.mubr.msk.f32.vlgmr.msra.gmra.mrb[2].mxu0 %vm522_vm6, %v425_v12 }
 0x1e3   : > { %v517_v14 = vpop.f32.mrb[0].mxu1 }
 0x1e4   : > { %v521_v15 = vmax.f32 %v517_v14, 0.0  ;;  %v889_v16 = vpop.f32.mrb[1].mxu1 }
 0x1e6   : > { %893 = vmatmul.mubr.msk.f32.vlgmr.msra.gmra.mrb[2].mxu1 %vm522_vm6, %v521_v15 }
 0x2b4   : > { %v669_v19 = vpop.f32.mrb[2].mxu0 }
 0x2b5   : > { %v899_v20 = vpop.f32.mrb[3].mxu0 }
 0x2b9   : > { %v596_v21 = vpop.f32.mrb[2].mxu1 }
 0x2ba   : > { %v670_v22 = vadd.f32 %v669_v19, %v596_v21  ;;  %v894_v23 = vpop.f32.mrb[3].mxu1 }
 0x2bc   : > { %v843_v24 = vmul.f32 -1.442695, %v670_v22 }
 0x2be   : > { %1038 = vpow2.f32 %v843_v24 }
 0x2c8   : > { %v1039_v25 = vpop.eup %1038 }
 0x2c9   : > { %v676_v26 = vadd.f32 1.0, %v1039_v25 }
 0x2cb   : > { %1040 = vrcp.f32 %v676_v26 }
 0x2d5   : > { %v1041_v27 = vpop.eup %1040 }
 0x2d6   : > { %v683_v28 = vsel %vm679_vm7, %v1041_v27, 0.0  ;;  %v680_v29 = vsel %vm679_vm7, %v1041_v27, -inf }
 0x2d7   : > { %684 = vadd.xlane.f32.xlu0 %v683_v28  ;;  %681 = vmax.xlane.f32.xlu1 %v680_v29 }
 0x364   : > { %v685_v31 = vpop.xlane.xlu0 %684  ;;  %v682_v33 = vpop.xlane.xlu1 %681 }
 0x365   : > { %v687_v34 = vmul.f32 0.03125, %v685_v31  ;;  %v696_v36 = vmul.f32 %v695_v32, %v682_v33 }
 0x367   : > { %v698_v35 = vmul.f32 %v697_v30, %v687_v34 }
 0x369   : > { %v699_v38 = vadd.f32 %v698_v35, %v696_v36 }
 0x36b   : > { %v701_v40 = vsub.f32 %v699_v38, %v700_v37 }
 0x36d   : > { %v707_v42 = vmul.f32 %v706_v39, %v701_v40 }
 0x36f   : > { %v709_v44 = vmul.f32 %v708_v41, %v707_v42 }
 0x371   : > { %v711_v45 = vadd.f32 %v710_v43, %v709_v44 }
 0x373   : > { %v850_v46 = vmul.f32 -1.442695, %v711_v45 }
 0x375   : > { %1042 = vpow2.f32 %v850_v46 }
 0x37f   : > { %v1043_v47 = vpop.eup %1042 }
 0x380   : > { %v715_v48 = vadd.f32 1.0, %v1043_v47 }
 0x382   : > { %1044 = vrcp.f32 %v715_v48 }
 0x38c   : > { %v1045_v49 = vpop.eup %1044 }
 0x38d   : > { %v718_v50 = vmul.f32 %v1045_v49, %v1041_v27 }
 0x38f   : > { %719 = vst.msk [vmem:[%s1435_s25] sm:$0x1] %vm679_vm7, %v718_v50 }
 0x390 PF: > { %s851_s12 = sshll.u32 %s1205_s22, 4  ;;  %s733_s14 = sshll.u32 %s1435_s25, 4  ;;  %s734_s14 = int_to_ptr.vmem [resolvable:$true] %s733_s14 }
 0x391   : > { %s1470_s5 = scalar_lea.hbm %s1533_s4, %s851_s12  ;;  %s721_s9 = scalar_lea.sflag [#allocation6], %s242_s23 }
 0x392   : > { %s1091_s27 = scalar_lea.vmem %s734_s14, 16  ;;  %p1563_p4 = scmp.ne.s32.totalorder %s1551_s7, 0 }
 0x393   : > { %p1092_p13 = scmp.ne.s32.totalorder %s734_s14, %s1091_s27  ;;  %s1229_s15 = smov [#allocation9]  }
 0x394   : > { %s1095_s30 = sshll.u32 %s1229_s15, 4  ;;  %s1096_s30 = int_to_ptr.vmem [resolvable:$false] %s1095_s30 }
 0x395   : > { %p1093_p6 = pnand %p1092_p13, %p1563_p4  ;;  %s1097_s3 = scalar_lea.vmem %s1096_s30, 32 }
 0x396   : > { %p1098_p12 = scmp.lt.s32.totalorder %s734_s14, %s1096_s30  ;;  %p1099_p0 = scmp.lt.s32.totalorder %s1097_s3, %s1091_s27 }
 0x397   : > { %p1094_p10 = pneg %p1093_p6 }
 0x398   : > { %p1100_p2 = por %p1099_p0, %p1098_p12 }
 0x39a   : > { %p1101_p8 = pnand %p1100_p2, %p1094_p10 }
 0x39c   : > { %1104 = shalt.err (!%p1101_p8)
}
 0x39d   : > { %s1105_s22 = scalar_lea.hbm %s1470_s5, 16  ;;  %s1109_s8 = scalar_lea.hbm %s1533_s4, 32 }
 0x39e   : > { %p1106_p9 = scmp.ne.s32.totalorder %s1470_s5, %s1105_s22  ;;  %p1110_p5 = scmp.lt.u32.totalorder %s1470_s5, %s1533_s4 }
 0x39f   : > { %p1111_p7 = scmp.lt.u32.totalorder %s1109_s8, %s1105_s22  ;;  %p1113_p13 = scmp.lt.u32.totalorder %s1105_s22, %s1470_s5 }
 0x3a0   : > { %p1107_p11 = pnand %p1106_p9, %p1563_p4 }
 0x3a1   : > { %p1112_p3 = por %p1111_p7, %p1110_p5 }
 0x3a2   : > { %p1108_p1 = pneg %p1107_p11 }
 0x3a3   : > { %p1114_p6 = por %p1113_p13, %p1112_p3 }
 0x3a5   : > { %p1115_p10 = pnand %p1114_p6, %p1108_p1 }
 0x3a7   : > { %1118 = shalt.err (!%p1115_p10)
}
 0x3a8   : > { %921 = dma.vmem_to_hbm [thread:$0]  (%p1563_p4), %s734_s14, 16, %s1470_s5, %s721_s9  }
 0x3a9 PF: > { %s1564_s29 = sld [smem:[#allocation15_spill]]  ;;  %s1565_s6 = sld [smem:[#allocation13_spill]] }
 0x3aa   : > { %s1566_s21 = sld [smem:[#allocation16_spill]] }
 0x3af   : > { %p938_p12 = scmp.ge.s32.totalorder %s1564_s29, 2  ;;  %s745_s12 = sand.u32 1, %s1565_s6  }
 0x3b0   : > { %p1567_p0 = scmp.ne.s32.totalorder %s1566_s21, 0  ;;  %s746_s13 = scalar_lea.sflag [#allocation6], %s745_s12 }
 0x3b2   : > { %p932_p2 = pnand %p938_p12, %p1567_p0 }
 0x3b4   : > { %1172 = dma.done.wait (!%p932_p2), %s746_s13, 16  }
 0x3b5   : > { %1174 = vsyncadd (!%p932_p2), %s746_s13, 4294967280  ;;  %s21_s25 = sadd.s32 1, %s1564_s29   ;;  %s1568_s21 = sld [smem:[#allocation14_spill]] }
 0x3b6   : > { %p18_p8 = scmp.ge.s32.totalorder %s21_s25, 6   ;;  %s1569_s23 = sld [smem:[#allocation17_spill]] }
 0x3b7   : > { %s1570_s7 = sld [smem:[#allocation18_spill]]  ;;  %s1571_s15 = smov %s1181_s16 }
 0x3b8   : > { %s1572_s16 = smov %s1185_s17  ;;  %s1573_s17 = smov %s1386_s11 }
 0x3b9   : > { %s1574_s18 = smov %s1193_s19  ;;  %s1575_s19 = smov %s1197_s20 }
 0x3ba   : > { %s1576_s20 = smov %s1391_s28  ;;  %s1577_s22 = smov %s1213_s24 }
 0x3bb   :  { %20 = sbr.rel (!%p18_p8) target bundleno = 12 (0xc), region = 94 }
 0x3bd   : > { %s1578_s24 = smov %s1570_s7 }
 0x3c2   :  { %750 = vsyncpa [#allocation5], 1 }
 0x3c3   :  { %752 = vsyncpa [#allocation5 + $0x1], 1 }
 0x3c4   :  { %753 = vsyncpa [#allocation6], 1 }
 0x3c5   :  { %755 = vsyncpa [#allocation6 + $0x1], 1 }
 0x3c6   :  { %756 = vsyncpa [#allocation7], 1 }
 0x3c7   :  { %758 = vsyncpa [#allocation7 + $0x1], 1 }

</bundles_post_ra>
